<compile_context>
chip_gen: v7x
topology: tpu7x:2x2x1
jax: 0.10.0
libtpu: 0.0.40
codegen_flags: <defaults>
</compile_context>

<pallas_src>
import functools

import numpy as np

import jax
import jax.numpy as jnp
from jax import lax
from jax.experimental import pallas as pl
from jax.experimental.pallas import tpu as pltpu


# ---------------------------------------------------------------------------
# Kernel
# ---------------------------------------------------------------------------
def _textcnn_kernel(x_ref, wall_ref, sel_ref, bconv_ref, wl_ref, bl_ref,
                    o_ref, *, s_valid):
    """One batch tile of the TextCNN forward.

    x_ref:     (TB, S_pad, D) VMEM, x dtype (f32 or bf16)
    wall_ref:  (D, 12)        VMEM, x dtype  - [w3 | w4 | w5] rows stacked, transposed
    sel_ref:   (5, 12, 3)     VMEM f32       - per-offset column -> conv-group selector
    bconv_ref: (1, 3)         VMEM f32       - conv biases [b3, b4, b5]
    wl_ref:    (3, L)         VMEM f32       - linear weight (in x out)
    bl_ref:    (1, L)         VMEM f32       - linear bias
    o_ref:     (1, TB, L)     VMEM f32
    """
    TB, S_pad, D = x_ref.shape
    M = TB * S_pad

    # (TB*S_pad, D) is a layout-preserving view because S_pad is a multiple of
    # the sublane pack (wrapper guarantees it).  One big MXU matmul, f32 acc.
    x2d = x_ref[...].reshape(M, D)
    y = jnp.dot(x2d, wall_ref[...], preferred_element_type=jnp.float32)   # (M, 12)

    # conv_k[i] = sum_j Y[i + j, col(k, j)].  The row shift is an XLU sublane
    # roll; the column selection + per-group sum is a tiny MXU matmul, so no
    # lane-sparse sublane-slice temporaries ever hit the VPU.
    c = jnp.dot(y, sel_ref[0], preferred_element_type=jnp.float32)        # (M, 3)
    for j in range(1, 5):
        zj = pltpu.roll(y, shift=(-j) % M, axis=0)                        # rows i -> i + j
        c = c + jnp.dot(zj, sel_ref[j], preferred_element_type=jnp.float32)

    c = c.reshape(TB, S_pad, 3)                                           # view (S_pad % 8 == 0)
    c = jnp.maximum(c + bconv_ref[...], 0.0)                              # conv bias + ReLU

    # Mask conv positions that fall off the un-padded sentence (and any rows
    # contaminated by the roll wrap-around, which are always out of range):
    # group g uses kernel size 3 + g, valid iff pos <= s_valid - (3 + g).
    # ReLU output is >= 0, so masking with 0 never changes the max.
    pos = lax.broadcasted_iota(jnp.int32, (TB, S_pad, 3), 1)
    grp = lax.broadcasted_iota(jnp.int32, (TB, S_pad, 3), 2)
    c = jnp.where(pos + grp <= (s_valid - 3), c, 0.0)

    pooled = jnp.max(c, axis=1)                                           # (TB, 3)

    logits = jnp.dot(pooled, wl_ref[...],
                     preferred_element_type=jnp.float32) + bl_ref[...]    # (TB, L)
    # TODO(synk): output stays (TB, L) with L << 128 lanes (masked vst); the
    # writeback is tiny, so a lane-dense transposed output slab was skipped.
    o_ref[0] = logits.astype(o_ref.dtype)


# ---------------------------------------------------------------------------
# Tiling / wrapper
# ---------------------------------------------------------------------------
def _round_up(x, m):
    return (x + m - 1) // m * m


def _tpu_vmem_and_cores():
    """(physical VMEM bytes per TensorCore, TensorCores per chip) w/ fallbacks."""
    vmem = 64 << 20          # conservative (v7x-sized) default
    cores = 0
    try:
        info = pltpu.get_tpu_info()
        vmem = int(getattr(info, "vmem_capacity_bytes", vmem))
        for name in ("num_tensorcores", "tensorcore_count", "num_cores",
                     "core_count"):
            v = getattr(info, name, None)
            if v:
                cores = int(v)
                break
    except Exception:
        pass
    if cores <= 0:
        # Heuristic: 64 MiB/TC parts (v7x) have 2 TCs, 128 MiB parts have 1.
        cores = 2 if vmem <= (64 << 20) else 1
    return vmem, max(1, cores)


def _choose_tiling(B, S_pad, D, itemsize, vmem_cap, num_cores):
    """Pick (TB, num_grid_steps, vmem_limit_bytes) from a padded-layout model."""
    sub_pack = 32 // itemsize
    d_lanes = _round_up(D, 128)

    # Per-step, per-batch-element footprint:
    #   * input block (lane-padded, x dtype), double-buffered
    #   * ~4 f32 (S_pad, <=128-lane) intermediates: y, rolled copy, c, slack
    bytes_x = 2 * S_pad * d_lanes * itemsize
    bytes_tmp = 4 * S_pad * 128 * 4
    per_elem = bytes_x + bytes_tmp
    # Fixed: packed conv weights (double-buffered) + sel/linear/bias/output
    # blocks + compiler scratch slack.
    fixed = 2 * _round_up(D, sub_pack) * 128 * itemsize + (4 << 20)

    budget = min(int(vmem_cap * 0.55), 72 << 20)          # ~70 MiB v5e/v6e, ~35 MiB v7x
    vmem_limit = min(int(vmem_cap * 0.70), 96 << 20)      # explicit scoped limit

    tb = max(1, (budget - fixed) // per_elem)
    tb = min(tb, B)
    if num_cores >= 2 and B > 1:
        tb = min(tb, pl.cdiv(B, 2))      # >= 2 grid steps so both TCs get work
    if tb >= 8:
        tb = (tb // 8) * 8               # sublane-friendly batch tile
    tb = max(1, int(tb))

    g = pl.cdiv(B, tb)
    if num_cores >= 2 and g > 1 and g % 2 == 1:
        g += 1                           # even split across the two TensorCores
    return tb, int(g), int(vmem_limit)


def textcnn_forward(x, w3, b3, w4, b4, w5, b5, wl, bl, *, batch_tile=None):
    """TextCNN forward.

    x:  (B, S, D) float32 or bfloat16 (the module's (B, 1, S, D) with the unit
        channel squeezed).  bf16 halves HBM traffic; accumulation is f32.
    w3/w4/w5: (3, D)/(4, D)/(5, D) conv weights, b3/b4/b5 scalar biases.
    wl: (3, label_num) = PyTorch linear1.weight.T, bl: (label_num,).
    Returns (B, label_num) float32.
    """
    B, S, D = x.shape
    L = wl.shape[1]
    assert S >= 5, "sentence_max_size must be >= 5 (largest conv kernel)"

    itemsize = x.dtype.itemsize
    sub_pack = 32 // itemsize            # 8 rows/vreg for f32, 16 for bf16
    S_pad = _round_up(S, sub_pack)       # makes the in-kernel reshape a view

    vmem_cap, num_cores = _tpu_vmem_and_cores()
    if batch_tile is not None:
        TB = max(1, int(batch_tile))
        G = int(pl.cdiv(B, TB))
        vmem_limit = min(int(vmem_cap * 0.70), 96 << 20)
    else:
        TB, G, vmem_limit = _choose_tiling(B, S_pad, D, itemsize, vmem_cap,
                                           num_cores)
    B_pad = G * TB

    if (B_pad != B) or (S_pad != S):
        x = jnp.pad(x, ((0, B_pad - B), (0, S_pad - S), (0, 0)))

    # Pack every conv-weight row into one (D, 12) RHS; keep it in x's dtype so
    # bf16 inputs also halve the weight traffic.  Post-matmul math stays f32.
    wall = jnp.concatenate([w3, w4, w5], axis=0).T.astype(x.dtype)       # (D, 12)
    bconv = jnp.stack([b3, b4, b5]).reshape(1, 3).astype(jnp.float32)    # (1, 3)
    wl32 = wl.astype(jnp.float32)                                        # (3, L)
    bl2 = bl.reshape(1, L).astype(jnp.float32)                           # (1, L)

    # sel[j, c, g] == 1  <=>  packed column c belongs to conv group g
    # (kernel sizes 3/4/5) at row offset j.
    sel_np = np.zeros((5, 12, 3), np.float32)
    col = 0
    for g_idx, k in enumerate((3, 4, 5)):
        for j in range(k):
            sel_np[j, col, g_idx] = 1.0
            col += 1
    sel = jnp.asarray(sel_np)

    kernel = functools.partial(_textcnn_kernel, s_valid=S)

    flops = (2 * B_pad * S_pad * D * 12          # main matmul
             + 2 * B_pad * S_pad * 12 * 3 * 5    # selection matmuls
             + 2 * B_pad * 3 * L)                # final linear
    bytes_accessed = (B_pad * S_pad * D * itemsize
                      + D * 12 * itemsize + 5 * 12 * 3 * 4
                      + (3 * L + L + 3) * 4
                      + B_pad * L * 4)

    out = pl.pallas_call(
        kernel,
        out_shape=jax.ShapeDtypeStruct((G, TB, L), jnp.float32),
        grid_spec=pltpu.PrefetchScalarGridSpec(
            num_scalar_prefetch=0,
            grid=(G,),
            in_specs=[
                pl.BlockSpec((TB, S_pad, D), lambda g: (g, 0, 0)),
                pl.BlockSpec((D, 12), lambda g: (0, 0)),
                pl.BlockSpec((5, 12, 3), lambda g: (0, 0, 0)),
                pl.BlockSpec((1, 3), lambda g: (0, 0)),
                pl.BlockSpec((3, L), lambda g: (0, 0)),
                pl.BlockSpec((1, L), lambda g: (0, 0)),
            ],
            out_specs=pl.BlockSpec((1, TB, L), lambda g: (g, 0, 0)),
        ),
        compiler_params=pltpu.CompilerParams(
            dimension_semantics=("parallel",),
            vmem_limit_bytes=vmem_limit),
        cost_estimate=pl.CostEstimate(
            flops=int(flops), transcendentals=0,
            bytes_accessed=int(bytes_accessed)),
    )(x, wall, sel, bconv, wl32, bl2)

    return out.reshape(B_pad, L)[:B]


# ---------------------------------------------------------------------------
# Plain-JAX reference (PyTorch forward semantics)
# ---------------------------------------------------------------------------
def textcnn_reference(x, w3, b3, w4, b4, w5, b5, wl, bl):
    x = x.astype(jnp.float32)

    def conv_pool(xb, w, b):                 # xb: (S, D), w: (k, D)
        k = w.shape[0]
        S = xb.shape[0]
        vals = [jnp.sum(xb[i:i + k] * w) + b for i in range(S - k + 1)]
        c = jnp.stack(vals)                  # (S-k+1,)
        return jnp.max(jax.nn.relu(c))       # max-pool over full extent

    feats = jnp.stack([
        jnp.stack([conv_pool(xb, w3, b3),
                   conv_pool(xb, w4, b4),
                   conv_pool(xb, w5, b5)]) for xb in x
    ])                                       # (B, 3)
    return feats @ wl.astype(jnp.float32) + bl.astype(jnp.float32)


if __name__ == "__main__":
    B = 8              # batch
    S = 16             # sentence_max_size
    D = 32             # word_embedding_dimension
    L = 4              # label_num
    # out_channel is unused by the module (conv out-channels hardcoded to 1).

    key = jax.random.PRNGKey(0)
    keys = jax.random.split(key, 10)
    x = jax.random.normal(keys[0], (B, S, D), dtype=jnp.float32)

    w3 = jax.random.normal(keys[1], (3, D), jnp.float32) * 0.1
    b3 = jax.random.normal(keys[2], (), jnp.float32) * 0.1
    w4 = jax.random.normal(keys[3], (4, D), jnp.float32) * 0.1
    b4 = jax.random.normal(keys[4], (), jnp.float32) * 0.1
    w5 = jax.random.normal(keys[5], (5, D), jnp.float32) * 0.1
    b5 = jax.random.normal(keys[6], (), jnp.float32) * 0.1
    wl = jax.random.normal(keys[7], (3, L), jnp.float32) * 0.5   # linear1.weight.T
    bl = jax.random.normal(keys[8], (L,), jnp.float32) * 0.1

    # f32 path.
    out = jax.block_until_ready(textcnn_forward(x, w3, b3, w4, b4, w5, b5, wl, bl))
    ref = textcnn_reference(x, w3, b3, w4, b4, w5, b5, wl, bl)
    assert out.shape == (B, L), out.shape
    assert jnp.allclose(out, ref, atol=3e-2, rtol=3e-2), (out, ref)

    # bf16 input path (halves HBM traffic of the bandwidth-bound x read).
    out_bf16 = jax.block_until_ready(
        textcnn_forward(x.astype(jnp.bfloat16), w3, b3, w4, b4, w5, b5, wl, bl))
    assert out_bf16.shape == (B, L)
    assert bool(jnp.all(jnp.isfinite(out_bf16)))
    assert jnp.allclose(out_bf16, ref, atol=2e-1, rtol=2e-1), (out_bf16, ref)

    # Ragged shapes: exercises S padding (21 -> 24), batch padding and masking.
    B2, S2 = 5, 21
    x2 = jax.random.normal(keys[9], (B2, S2, D), dtype=jnp.float32)
    out2 = jax.block_until_ready(
        textcnn_forward(x2, w3, b3, w4, b4, w5, b5, wl, bl))
    ref2 = textcnn_reference(x2, w3, b3, w4, b4, w5, b5, wl, bl)
    assert out2.shape == (B2, L), out2.shape
    assert jnp.allclose(out2, ref2, atol=3e-2, rtol=3e-2), (out2, ref2)

    print("KERNEL_OK")
</pallas_src>

<mosaic_0001>
module attributes {stable_mosaic.version = 11 : i64} {
  func.func @_textcnn_kernel(%arg0: i32, %arg1: memref<4x16x32xf32, #tpu.memory_space<vmem>>, %arg2: memref<32x12xf32, #tpu.memory_space<vmem>>, %arg3: memref<5x12x3xf32, #tpu.memory_space<vmem>>, %arg4: memref<1x3xf32, #tpu.memory_space<vmem>>, %arg5: memref<3x4xf32, #tpu.memory_space<vmem>>, %arg6: memref<1x4xf32, #tpu.memory_space<vmem>>, %arg7: memref<1x4x4xf32, #tpu.memory_space<vmem>>) attributes {dimension_semantics = [#tpu.dimension_semantics<parallel>], iteration_bounds = array<i64: 2>, scalar_prefetch = 0 : i64, scratch_operands = 0 : i64, tpu.core_type = #tpu.core_type<tc>, window_params = [{transform_indices = @transform_0, window_bounds = array<i64: 4, 16, 32>}, {pipeline_mode = #tpu.pipeline_mode<synchronous>, transform_indices = @transform_1, window_bounds = array<i64: 32, 12>}, {pipeline_mode = #tpu.pipeline_mode<synchronous>, transform_indices = @transform_2, window_bounds = array<i64: 5, 12, 3>}, {pipeline_mode = #tpu.pipeline_mode<synchronous>, transform_indices = @transform_3, window_bounds = array<i64: 1, 3>}, {pipeline_mode = #tpu.pipeline_mode<synchronous>, transform_indices = @transform_4, window_bounds = array<i64: 3, 4>}, {pipeline_mode = #tpu.pipeline_mode<synchronous>, transform_indices = @transform_5, window_bounds = array<i64: 1, 4>}, {transform_indices = @transform_6, window_bounds = array<i64: 1, 4, 4>}]} {
    %c0 = arith.constant 0 : index
    %c0_0 = arith.constant 0 : index
    %c0_1 = arith.constant 0 : index
    %0 = vector.load %arg1[%c0, %c0_0, %c0_1] : memref<4x16x32xf32, #tpu.memory_space<vmem>>, vector<4x16x32xf32>
    %1 = vector.shape_cast %0 : vector<4x16x32xf32> to vector<64x32xf32>
    %c0_2 = arith.constant 0 : index
    %c0_3 = arith.constant 0 : index
    %2 = vector.load %arg2[%c0_2, %c0_3] : memref<32x12xf32, #tpu.memory_space<vmem>>, vector<32x12xf32>
    %cst = arith.constant dense<0.000000e+00> : vector<64x12xf32>
    %3 = tpu.matmul %1, %2, %cst {dimension_numbers = #tpu.dot_dimension_numbers<[1], [0], [0], [1], [0, 0, 1, 1], [], []>} : vector<64x32xf32>, vector<32x12xf32>, vector<64x12xf32> -> vector<64x12xf32>
    %c0_4 = arith.constant 0 : index
    %c0_5 = arith.constant 0 : index
    %c0_6 = arith.constant 0 : index
    %4 = vector.load %arg3[%c0_4, %c0_5, %c0_6] : memref<5x12x3xf32, #tpu.memory_space<vmem>>, vector<1x12x3xf32>
    %5 = vector.shape_cast %4 : vector<1x12x3xf32> to vector<12x3xf32>
    %cst_7 = arith.constant dense<0.000000e+00> : vector<64x3xf32>
    %6 = tpu.matmul %3, %5, %cst_7 {dimension_numbers = #tpu.dot_dimension_numbers<[1], [0], [0], [1], [0, 0, 1, 1], [], []>} : vector<64x12xf32>, vector<12x3xf32>, vector<64x3xf32> -> vector<64x3xf32>
    %c63_i32 = arith.constant 63 : i32
    %7 = tpu.dynamic_rotate %3 by %c63_i32 dim 0 : vector<64x12xf32>, i32 -> vector<64x12xf32>
    %c1 = arith.constant 1 : index
    %c0_8 = arith.constant 0 : index
    %c0_9 = arith.constant 0 : index
    %8 = vector.load %arg3[%c1, %c0_8, %c0_9] : memref<5x12x3xf32, #tpu.memory_space<vmem>>, vector<1x12x3xf32>
    %9 = vector.shape_cast %8 : vector<1x12x3xf32> to vector<12x3xf32>
    %cst_10 = arith.constant dense<0.000000e+00> : vector<64x3xf32>
    %10 = tpu.matmul %7, %9, %cst_10 {dimension_numbers = #tpu.dot_dimension_numbers<[1], [0], [0], [1], [0, 0, 1, 1], [], []>} : vector<64x12xf32>, vector<12x3xf32>, vector<64x3xf32> -> vector<64x3xf32>
    %11 = arith.addf %6, %10 : vector<64x3xf32>
    %c62_i32 = arith.constant 62 : i32
    %12 = tpu.dynamic_rotate %3 by %c62_i32 dim 0 : vector<64x12xf32>, i32 -> vector<64x12xf32>
    %c2 = arith.constant 2 : index
    %c0_11 = arith.constant 0 : index
    %c0_12 = arith.constant 0 : index
    %13 = vector.load %arg3[%c2, %c0_11, %c0_12] : memref<5x12x3xf32, #tpu.memory_space<vmem>>, vector<1x12x3xf32>
    %14 = vector.shape_cast %13 : vector<1x12x3xf32> to vector<12x3xf32>
    %cst_13 = arith.constant dense<0.000000e+00> : vector<64x3xf32>
    %15 = tpu.matmul %12, %14, %cst_13 {dimension_numbers = #tpu.dot_dimension_numbers<[1], [0], [0], [1], [0, 0, 1, 1], [], []>} : vector<64x12xf32>, vector<12x3xf32>, vector<64x3xf32> -> vector<64x3xf32>
    %16 = arith.addf %11, %15 : vector<64x3xf32>
    %c61_i32 = arith.constant 61 : i32
    %17 = tpu.dynamic_rotate %3 by %c61_i32 dim 0 : vector<64x12xf32>, i32 -> vector<64x12xf32>
    %c3 = arith.constant 3 : index
    %c0_14 = arith.constant 0 : index
    %c0_15 = arith.constant 0 : index
    %18 = vector.load %arg3[%c3, %c0_14, %c0_15] : memref<5x12x3xf32, #tpu.memory_space<vmem>>, vector<1x12x3xf32>
    %19 = vector.shape_cast %18 : vector<1x12x3xf32> to vector<12x3xf32>
    %cst_16 = arith.constant dense<0.000000e+00> : vector<64x3xf32>
    %20 = tpu.matmul %17, %19, %cst_16 {dimension_numbers = #tpu.dot_dimension_numbers<[1], [0], [0], [1], [0, 0, 1, 1], [], []>} : vector<64x12xf32>, vector<12x3xf32>, vector<64x3xf32> -> vector<64x3xf32>
    %21 = arith.addf %16, %20 : vector<64x3xf32>
    %c60_i32 = arith.constant 60 : i32
    %22 = tpu.dynamic_rotate %3 by %c60_i32 dim 0 : vector<64x12xf32>, i32 -> vector<64x12xf32>
    %c4 = arith.constant 4 : index
    %c0_17 = arith.constant 0 : index
    %c0_18 = arith.constant 0 : index
    %23 = vector.load %arg3[%c4, %c0_17, %c0_18] : memref<5x12x3xf32, #tpu.memory_space<vmem>>, vector<1x12x3xf32>
    %24 = vector.shape_cast %23 : vector<1x12x3xf32> to vector<12x3xf32>
    %cst_19 = arith.constant dense<0.000000e+00> : vector<64x3xf32>
    %25 = tpu.matmul %22, %24, %cst_19 {dimension_numbers = #tpu.dot_dimension_numbers<[1], [0], [0], [1], [0, 0, 1, 1], [], []>} : vector<64x12xf32>, vector<12x3xf32>, vector<64x3xf32> -> vector<64x3xf32>
    %26 = arith.addf %21, %25 : vector<64x3xf32>
    %27 = vector.shape_cast %26 : vector<64x3xf32> to vector<4x16x3xf32>
    %c0_20 = arith.constant 0 : index
    %c0_21 = arith.constant 0 : index
    %28 = vector.load %arg4[%c0_20, %c0_21] : memref<1x3xf32, #tpu.memory_space<vmem>>, vector<1x3xf32>
    %29 = vector.shape_cast %28 : vector<1x3xf32> to vector<1x1x3xf32>
    %30 = vector.broadcast %29 : vector<1x1x3xf32> to vector<4x16x3xf32>
    %31 = arith.addf %27, %30 : vector<4x16x3xf32>
    %cst_22 = arith.constant 0.000000e+00 : f32
    %32 = vector.broadcast %cst_22 : f32 to vector<4x16x3xf32>
    %33 = arith.maximumf %31, %32 : vector<4x16x3xf32>
    %34 = tpu.iota {dimensions = array<i32: 1>} : vector<4x16x3xi32>
    %35 = tpu.iota {dimensions = array<i32: 2>} : vector<4x16x3xi32>
    %36 = arith.addi %34, %35 : vector<4x16x3xi32>
    %c13_i32 = arith.constant 13 : i32
    %37 = vector.broadcast %c13_i32 : i32 to vector<4x16x3xi32>
    %38 = arith.cmpi sle, %36, %37 : vector<4x16x3xi32>
    %cst_23 = arith.constant 0.000000e+00 : f32
    %39 = vector.broadcast %cst_23 : f32 to vector<4x16x3xf32>
    %40 = arith.select %38, %33, %39 : vector<4x16x3xi1>, vector<4x16x3xf32>
    %cst_24 = arith.constant dense<0xFF800000> : vector<4x3xf32>
    %41 = vector.multi_reduction <maximumf>, %40, %cst_24 [1] : vector<4x16x3xf32> to vector<4x3xf32>
    %c0_25 = arith.constant 0 : index
    %c0_26 = arith.constant 0 : index
    %42 = vector.load %arg5[%c0_25, %c0_26] : memref<3x4xf32, #tpu.memory_space<vmem>>, vector<3x4xf32>
    %cst_27 = arith.constant dense<0.000000e+00> : vector<4x4xf32>
    %43 = tpu.matmul %41, %42, %cst_27 {dimension_numbers = #tpu.dot_dimension_numbers<[1], [0], [0], [1], [0, 0, 1, 1], [], []>} : vector<4x3xf32>, vector<3x4xf32>, vector<4x4xf32> -> vector<4x4xf32>
    %c0_28 = arith.constant 0 : index
    %c0_29 = arith.constant 0 : index
    %44 = vector.load %arg6[%c0_28, %c0_29] : memref<1x4xf32, #tpu.memory_space<vmem>>, vector<1x4xf32>
    %45 = vector.broadcast %44 : vector<1x4xf32> to vector<4x4xf32>
    %46 = arith.addf %43, %45 : vector<4x4xf32>
    %c0_30 = arith.constant 0 : index
    %c0_31 = arith.constant 0 : index
    %c0_32 = arith.constant 0 : index
    %47 = vector.load %arg7[%c0_30, %c0_31, %c0_32] : memref<1x4x4xf32, #tpu.memory_space<vmem>>, vector<1x4x4xf32>
    %48 = vector.shape_cast %47 : vector<1x4x4xf32> to vector<4x4xf32>
    %49 = vector.shape_cast %46 : vector<4x4xf32> to vector<1x4x4xf32>
    tpu.vector_store %arg7[%c0_30, %c0_31, %c0_32], %49 {strides = array<i32>} : memref<1x4x4xf32, #tpu.memory_space<vmem>>, vector<1x4x4xf32>,
    return
  }
  func.func @transform_0(%arg0: i32) -> (i32, i32, i32) {
    %c0_i32 = arith.constant 0 : i32
    %c0_i32_0 = arith.constant 0 : i32
    %c0_i32_1 = arith.constant 0 : i32
    return %arg0, %c0_i32, %c0_i32_0 : i32, i32, i32
  }
  func.func @transform_1(%arg0: i32) -> (i32, i32) {
    %c0_i32 = arith.constant 0 : i32
    %c0_i32_0 = arith.constant 0 : i32
    %c0_i32_1 = arith.constant 0 : i32
    return %c0_i32, %c0_i32_0 : i32, i32
  }
  func.func @transform_2(%arg0: i32) -> (i32, i32, i32) {
    %c0_i32 = arith.constant 0 : i32
    %c0_i32_0 = arith.constant 0 : i32
    %c0_i32_1 = arith.constant 0 : i32
    %c0_i32_2 = arith.constant 0 : i32
    return %c0_i32, %c0_i32_0, %c0_i32_1 : i32, i32, i32
  }
  func.func @transform_3(%arg0: i32) -> (i32, i32) {
    %c0_i32 = arith.constant 0 : i32
    %c0_i32_0 = arith.constant 0 : i32
    %c0_i32_1 = arith.constant 0 : i32
    return %c0_i32, %c0_i32_0 : i32, i32
  }
  func.func @transform_4(%arg0: i32) -> (i32, i32) {
    %c0_i32 = arith.constant 0 : i32
    %c0_i32_0 = arith.constant 0 : i32
    %c0_i32_1 = arith.constant 0 : i32
    return %c0_i32, %c0_i32_0 : i32, i32
  }
  func.func @transform_5(%arg0: i32) -> (i32, i32) {
    %c0_i32 = arith.constant 0 : i32
    %c0_i32_0 = arith.constant 0 : i32
    %c0_i32_1 = arith.constant 0 : i32
    return %c0_i32, %c0_i32_0 : i32, i32
  }
  func.func @transform_6(%arg0: i32) -> (i32, i32, i32) {
    %c0_i32 = arith.constant 0 : i32
    %c0_i32_0 = arith.constant 0 : i32
    %c0_i32_1 = arith.constant 0 : i32
    return %arg0, %c0_i32, %c0_i32_0 : i32, i32, i32
  }
}

</mosaic_0001>

<bundles_post_ra>
// kernel: tpu_custom_call.1
= control target key start
LH: loop header
LB: loop body
LE: loop exit
PB: predicated region body
PF: predicated region fallthrough
CT: control target
= control target key end

     0   :  { %11 = vsyncpa [#allocation3], 0  ;;  %s2280_s0 = inlined_call_operand.vmem [shape: f32[8,16,32], index: 0, kind: input, shape index: {}]   ;;  %s2281_s1 = inlined_call_operand.vmem [shape: f32[32,12], index: 1, kind: input, shape index: {}]   ;;  %s2282_s2 = inlined_call_operand.vmem [shape: f32[5,12,3], index: 2, kind: input, shape index: {}]   ;;  %s2283_s3 = inlined_call_operand.vmem [shape: f32[1,3], index: 3, kind: input, shape index: {}]   ;;  %s2284_s4 = inlined_call_operand.vmem [shape: f32[3,4], index: 4, kind: input, shape index: {}]   ;;  %s2285_s5 = inlined_call_operand.vmem [shape: f32[1,4], index: 5, kind: input, shape index: {}]   ;;  %s2286_s6 = inlined_call_operand.hbm [shape: f32[2,4,4], index: 6, kind: output, shape index: {}]  }
   0x1   :  { %13 = vsyncpa [#allocation3 + $0x1], 0  ;;  %s1875_s21 = smov 0   ;;  %s1877_s22 = smov 0  }
   0x2   :  { %s1879_s23 = smov 0   ;;  %s1881_s24 = smov 0  }
   0x3 LB: > { %s1896_s25 = sadd.s32 4294967295, %s1834_s24   ;;  %s1411_s26 = sadd.s32 4294967294, %s1834_s24   ;;  %s1834_s24 = sphi %s1881_s24, %s2294_s24   ;;  %s1830_s23 = sphi %s1879_s23, %s2293_s23   ;;  %s1826_s22 = sphi %s1877_s22, %s2292_s22   ;;  %s1822_s21 = sphi %s1875_s21, %s2291_s21  }
   0x4   : > { %s1900_s27 = sadd.s32 1, %s1834_s24   ;;  %s157_s28 = sadd.s32 1, %s1830_s23 }
   0x5   : > { %s154_s29 = ssub.s32 %s1834_s24, %s1900_s27  ;;  %p167_p0 = scmp.ne.s32.totalorder %s1830_s23, %s1826_s22 }
   0x6   : > { %p155_p1 = scmp.eq.s32.totalorder %s154_s29, 0  ;;  %p168_p2 = scmp.eq.s32.totalorder %s1896_s25, 1 }
   0x7   : > { %p173_p3 = scmp.ne.s32.totalorder %s1826_s22, %s1822_s21  ;;  %p174_p4 = scmp.eq.s32.totalorder %s1411_s26, 1 }
   0x8   : > { %s1911_s30 = scalar_select %p155_p1, %s1830_s23, %s157_s28  }
   0x9   : > { %p1913_p5 = por %p168_p2, %p167_p0  ;;  %p1917_p6 = por %p174_p4, %p173_p3 }
   0xa   : > { %p1414_p7 = scmp.ge.s32.totalorder %s1834_s24, 1  ;;  %p217_p8 = scmp.lt.s32.totalorder %s1834_s24, 3 }
   0xc   : > { %p218_p9 = pnand %p1414_p7, %p217_p8 }
   0xd   : > { %v263_v0 = vld [vmem:[%s2281_s1] sm:$0xff] (!%p218_p9)  ;;  %v264_v1 = vld [vmem:[%s2281_s1 + $0x8] sm:$0xff] (!%p218_p9)  ;;  %v265_v2 = vld [vmem:[%s2281_s1 + $0x10] sm:$0xff] (!%p218_p9)  ;;  %s1416_s15 = sshll.u32 (!%p218_p9), %s1896_s25, 2  ;;  %vm267_vm0 = vcmask (!%p218_p9), 261120   ;;  %vm446_vm1 = vcmask (!%p218_p9), 1043456   ;;  %v407_v24 = vlaneseq (!%p218_p9) }
   0xe   : > { %221 = sbr.rel (%p218_p9) target bundleno = 765 (0x2fd), region = 44  ;;  %v1658_v3 = vpack.c.bf16 (!%p218_p9), %v264_v1, %v263_v0  ;;  %v266_v4 = vld [vmem:[%s2281_s1 + $0x18] sm:$0xff] (!%p218_p9)  ;;  %p249_p10 = scmp.lt.s32.totalorder (!%p218_p9), %s1416_s15, 7  ;;  %v1427_v14 = vld [vmem:[%s2282_s2 + $0x10] sm:$0xff] (!%p218_p9)  ;;  %vm1836_vm2 = vmmov (!%p218_p9), 1   ;;  %v397_v18 = vld [vmem:[%s2282_s2] sm:$0xff] (!%p218_p9) }
   0xf   : > { %v1662_v5 = vpack.c.bf16 (!%p218_p9), %v266_v4, %v265_v2  ;;  %v1428_v15 = vld [vmem:[%s2282_s2 + $0x18] sm:$0xf] (!%p218_p9)  ;;  %vm1953_vm3 = vmpackc.low (!%p218_p9), %vm446_vm1, %vm1836_vm2  ;;  %v398_v19 = vld [vmem:[%s2282_s2 + $0x8] sm:$0xf] (!%p218_p9)  ;;  %v1985_v25 = vshrl.u32 (!%p218_p9), %v407_v24, 7  ;;  %vm421_vm5 = vcmask (!%p218_p9), 97280  }
  0x10   : > { %1659 = vmatprep.subr.bf16.mxu0 (!%p218_p9), %v1658_v3  ;;  %v1666_v16 = vpack.c.bf16 (!%p218_p9), %v1428_v15, %v1427_v14  ;;  %v1672_v20 = vpack.c.bf16 (!%p218_p9), %v398_v19, %v397_v18  ;;  %v1447_v21 = vld [vmem:[%s2282_s2 + $0x20] sm:$0xff] (!%p218_p9)  ;;  %v1448_v22 = vld [vmem:[%s2282_s2 + $0x28] sm:$0xf] (!%p218_p9)  ;;  %v1458_v36 = vld [vmem:[%s2282_s2 + $0x30] sm:$0xff] (!%p218_p9)  ;;  %vm1262_vm9 = vcmask (!%p218_p9), 1042432   ;;  %vm1838_vm10 = vmmov (!%p218_p9), 0  }
  0x11   : > { %1661 = vmatpush3.bf16.msra.mxu0 (!%p218_p9), %v1658_v3  ;;  %v1979_v23 = vpack.c.bf16 (!%p218_p9), %v1448_v22, %v1447_v21  ;;  %vm409_vm4 = vcmp.lt.s32.totalorder (!%p218_p9), %v1985_v25, 7  ;;  %vm695_vm6 = vcmp.lt.s32.totalorder (!%p218_p9), %v1985_v25, 6  ;;  %vm855_vm7 = vcmp.lt.s32.totalorder (!%p218_p9), %v1985_v25, 5  ;;  %v1459_v40 = vld [vmem:[%s2282_s2 + $0x38] sm:$0xf] (!%p218_p9)  ;;  %v1469_v42 = vld [vmem:[%s2282_s2 + $0x40] sm:$0xff] (!%p218_p9) }
  0x12   : > { %1663 = vmatprep.subr.bf16.mxu0 (!%p218_p9), %v1662_v5  ;;  %1696 = vmatprep.subr.msk.bf16.mxu1 (!%p218_p9), %vm1953_vm3, %v1672_v20  ;;  %vm1015_vm8 = vcmp.lt.s32.totalorder (!%p218_p9), %v1985_v25, 4  ;;  %v1470_v43 = vld [vmem:[%s2282_s2 + $0x48] sm:$0xf] (!%p218_p9)  ;;  %v2047_v53 = vpack.c.bf16 (!%p218_p9), %v1459_v40, %v1458_v36  ;;  %v1242_v17 = vld [vmem:[%s2284_s4] sm:$0x7] (!%p218_p9)  ;;  %vm1205_vm12 = vcmask (!%p218_p9), 23552  }
  0x13   : > { %1697 = vmatpush3.bf16.msk.msra.mxu1 (!%p218_p9), %vm1953_vm3, %v1672_v20  ;;  %v2049_v54 = vpack.c.bf16 (!%p218_p9), %v1470_v43, %v1469_v42  ;;  %vm1254_vm14 = vcmask (!%p218_p9), 1041409   ;;  %vm1256_vm15 = vcmask (!%p218_p9), 1042434   ;;  %s245_s16 = sand.u32 (!%p218_p9), 1, %s1826_s22   ;;  %s1485_s20 = sshll.u32 (!%p218_p9), %s1896_s25, 6  ;;  %vm1336_vm1 = vcmask (!%p218_p9), 27648  }
  0x14   : > { %1680 = vmatprep.subr.msk.bf16.mxu1 (!%p218_p9), %vm1953_vm3, %v1979_v23  ;;  %s1415_s17 = sshll.u32 (!%p218_p9), %s245_s16, 2  ;;  %s2238_s10 = scalar_lea.hbm (!%p218_p9), %s2286_s6, %s1485_s20 }
  0x15   : > { %s2296_s15 = smov (!%p249_p10, %s1416_s15), 7  ;;  %1665 = vmatpush3.bf16.msra.mxu0 %v1662_v5  ;;  %s1339_s11 = scalar_lea.sflag [#allocation3], %s245_s16 }
  0x16   : > { %s1488_s18 = sshll.u32 %s2296_s15, 4  ;;  %1668 = vmatprep.subr.msk.bf16.mxu0 %vm1953_vm3, %v1666_v16  ;;  %s1839_s25 = smov [#allocation2]  }
  0x17   : > { %s253_s26 = scalar_lea.vmem %s2280_s0, %s1488_s18  ;;  %s1776_s13 = sshll.u32 %s1839_s25, 4  ;;  %s1777_s13 = int_to_ptr.vmem [resolvable:$false] %s1776_s13 }
  0x18   : > { %v255_v6 = vld [vmem:[%s253_s26] sm:$0xff]  ;;  %v256_v7 = vld [vmem:[%s253_s26 + $0x8] sm:$0xff]  ;;  %v257_v8 = vld [vmem:[%s253_s26 + $0x10] sm:$0xff]  ;;  %s1778_s14 = scalar_lea.vmem %s1777_s13, 128 }
  0x19   : > { %1561 = vmatprep.mubr.msk.f32.mxu0 %vm267_vm0, %v255_v6  ;;  %v258_v9 = vld [vmem:[%s253_s26 + $0x18] sm:$0xff]  ;;  %v259_v10 = vld [vmem:[%s253_s26 + $0x20] sm:$0xff]  ;;  %v260_v11 = vld [vmem:[%s253_s26 + $0x28] sm:$0xff] }
  0x1a   : > { %1562 = vmatmul.mubr.msk.f32.vlgmr.msra.gmra.mrb[0].mxu0 %vm267_vm0, %v256_v7  ;;  %v261_v12 = vld [vmem:[%s253_s26 + $0x30] sm:$0xff]  ;;  %v262_v13 = vld [vmem:[%s253_s26 + $0x38] sm:$0xff]  ;;  %s247_s26 = scalar_lea.vmem [#allocation2], %s1415_s17 }
  0x1b   : > { %1564 = vmatprep.mubr.msk.f32.mxu0 %vm267_vm0, %v257_v8  ;;  %1671 = vmatpush3.bf16.msk.msra.mxu0 %vm1953_vm3, %v1666_v16  ;;  %s1352_s28 = sshll.u32 %s247_s26, 4  ;;  %s2240_s28 = int_to_ptr.vmem [resolvable:$true] %s1352_s28 }
  0x1c   : > { %1674 = vmatprep.subr.msk.bf16.mxu0 %vm1953_vm3, %v1672_v20  ;;  %s1772_s12 = scalar_lea.vmem %s2240_s28, 64  ;;  %p1779_p0 = scmp.lt.s32.totalorder %s2240_s28, %s1777_s13 }
  0x1d   : > { %p1773_p11 = scmp.ne.s32.totalorder %s2240_s28, %s1772_s12  ;;  %p1780_p1 = scmp.lt.s32.totalorder %s1778_s14, %s1772_s12 }
  0x1e   : > { %1565 = vmatmul.mubr.msk.f32.gmra.mrb[2].mxu0 %vm267_vm0, %v258_v9 }
  0x1f   : > { %1567 = vmatprep.mubr.msk.f32.mxu0 %vm267_vm0, %v259_v10  ;;  %p1774_p12 = pnand %p1773_p11, %p1913_p5  ;;  %p1781_p2 = por %p1780_p1, %p1779_p0 }
  0x21   : > { %p1775_p13 = pneg %p1774_p12 }
  0x22   : > { %1568 = vmatmul.mubr.msk.f32.gmra.mrb[4].mxu0 %vm267_vm0, %v260_v11 }
  0x23   : > { %1570 = vmatprep.mubr.msk.f32.mxu0 %vm267_vm0, %v261_v12  ;;  %p1782_p3 = pnand %p1781_p2, %p1775_p13 }
  0x26   : > { %1571 = vmatmul.mubr.msk.f32.gmra.mrb[6].mxu0 %vm267_vm0, %v262_v13  ;;  %vm1258_vm0 = vcmask 1043459  }
  0xed   : > { %v1988_v26 = vpop.f32.mrb[0].mxu0 }
  0xee   : > { %v1993_v27 = vpop.f32.mrb[1].mxu0  ;;  %v400_v28 = vrot.slane %v1988_v26, 1  ;;  %v688_v29 = vrot.slane %v1988_v26, 2  ;;  %v848_v30 = vrot.slane %v1988_v26, 3  ;;  %v1008_v31 = vrot.slane %v1988_v26, 4 }
  0xef   : > { %v399_v32 = vrot.slane %v1993_v27, 1  ;;  %v687_v33 = vrot.slane %v1993_v27, 2  ;;  %v847_v34 = vrot.slane %v1993_v27, 3  ;;  %v1007_v35 = vrot.slane %v1993_v27, 4 }
  0xf1   : > { %v2006_v37 = vpop.f32.mrb[2].mxu0  ;;  %v416_v38 = vsel %vm409_vm4, %v399_v32, %v400_v28  ;;  %v702_v39 = vsel %vm695_vm6, %v687_v33, %v688_v29  ;;  %v2023_v41 = vsel %vm855_vm7, %v847_v34, %v848_v30  ;;  %v2035_v44 = vsel %vm1015_vm8, %v1007_v35, %v1008_v31 }
  0xf2   : > { %v2037_v45 = vpop.f32.mrb[3].mxu0  ;;  %1577 = vmatprep.mubr.msk.f32.mxu0 %vm421_vm5, %v416_v38  ;;  %v402_v46 = vrot.slane %v2006_v37, 1  ;;  %v690_v47 = vrot.slane %v2006_v37, 2  ;;  %v850_v48 = vrot.slane %v2006_v37, 3  ;;  %v1010_v55 = vrot.slane %v2006_v37, 4 }
  0xf3   : > { %v401_v49 = vrot.slane %v2037_v45, 1  ;;  %v689_v50 = vrot.slane %v2037_v45, 2  ;;  %v849_v51 = vrot.slane %v2037_v45, 3  ;;  %v1009_v52 = vrot.slane %v2037_v45, 4 }
  0xf5   : > { %v2052_v56 = vpop.f32.mrb[4].mxu0  ;;  %v415_v57 = vsel %vm409_vm4, %v400_v28, %v401_v49  ;;  %v414_v58 = vsel %vm409_vm4, %v401_v49, %v402_v46  ;;  %v701_v59 = vsel %vm695_vm6, %v688_v29, %v689_v50  ;;  %v700_v60 = vsel %vm695_vm6, %v689_v50, %v690_v47 }
  0xf6   : > { %v2062_v61 = vpop.f32.mrb[5].mxu0  ;;  %1578 = vmatmul.mubr.msk.f32.vlgmr.msra.gmra.mrb[8].mxu0 %vm421_vm5, %v415_v57  ;;  %v404_v62 = vrot.slane %v2052_v56, 1  ;;  %v692_v63 = vrot.slane %v2052_v56, 2  ;;  %v2069_v0 = vsel %vm855_vm7, %v848_v30, %v849_v51  ;;  %v2073_v1 = vsel %vm855_vm7, %v849_v51, %v850_v48 }
  0xf7   : > { %1580 = vmatprep.mubr.msk.f32.mxu0 %vm421_vm5, %v414_v58  ;;  %v403_v2 = vrot.slane %v2062_v61, 1  ;;  %1677 = vmatpush3.bf16.msk.msra.mxu0 %vm1953_vm3, %v1672_v20  ;;  %v691_v3 = vrot.slane %v2062_v61, 2  ;;  %v851_v4 = vrot.slane %v2062_v61, 3  ;;  %v852_v5 = vrot.slane %v2052_v56, 3 }
  0xf8   : > { %v2084_v6 = vsel %vm1015_vm8, %v1008_v31, %v1009_v52  ;;  %v2088_v7 = vsel %vm1015_vm8, %v1009_v52, %v1010_v55  ;;  %v1011_v8 = vrot.slane %v2062_v61, 4  ;;  %v1012_v9 = vrot.slane %v2052_v56, 4 }
  0xf9   : > { %v1572_v10 = vpop.f32.mrb[6].mxu0  ;;  %v413_v11 = vsel %vm409_vm4, %v402_v46, %v403_v2  ;;  %v412_v12 = vsel %vm409_vm4, %v403_v2, %v404_v62  ;;  %v699_v13 = vsel %vm695_vm6, %v690_v47, %v691_v3  ;;  %v698_v14 = vsel %vm695_vm6, %v691_v3, %v692_v63 }
  0xfa   : > { %v388_v15 = vpop.f32.mrb[7].mxu0  ;;  %1581 = vmatmul.mubr.msk.f32.gmra.mrb[10].mxu0 %vm421_vm5, %v413_v11  ;;  %v406_v16 = vrot.slane %v1572_v10, 1  ;;  %v694_v18 = vrot.slane %v1572_v10, 2  ;;  %v859_v19 = vsel %vm855_vm7, %v850_v48, %v851_v4  ;;  %v858_v20 = vsel %vm855_vm7, %v851_v4, %v852_v5 }
  0xfb   : > { %1583 = vmatprep.mubr.msk.f32.mxu0 %vm421_vm5, %v412_v12  ;;  %1602 = vmatprep.mubr.msk.f32.mxu1 %vm421_vm5, %v388_v15  ;;  %v405_v21 = vrot.slane %v388_v15, 1  ;;  %v693_v22 = vrot.slane %v388_v15, 2  ;;  %v853_v28 = vrot.slane %v388_v15, 3  ;;  %v854_v29 = vrot.slane %v1572_v10, 3 }
  0xfc   : > { %1603 = vmatmul.mubr.msk.f32.vlgmr.msra.gmra.mrb[0].mxu1 %vm421_vm5, %v1572_v10  ;;  %v417_v30 = vsel %vm409_vm4, %v406_v16, %v399_v32  ;;  %v703_v31 = vsel %vm695_vm6, %v694_v18, %v687_v33  ;;  %v1019_v36 = vsel %vm1015_vm8, %v1010_v55, %v1011_v8  ;;  %v1018_v38 = vsel %vm1015_vm8, %v1011_v8, %v1012_v9  ;;  %v1480_v55 = vld [vmem:[%s2283_s3] ss:$0 sm:$0xff] }
  0xfd   : > { %1683 = vmatpush3.bf16.msk.msra.mxu1 %vm1953_vm3, %v1979_v23  ;;  %1609 = vmatprep.mubr.msk.f32.mxu1 %vm421_vm5, %v702_v39  ;;  %v411_v32 = vsel %vm409_vm4, %v404_v62, %v405_v21  ;;  %v410_v40 = vsel %vm409_vm4, %v405_v21, %v406_v16  ;;  %v697_v33 = vsel %vm695_vm6, %v692_v63, %v693_v22  ;;  %v1013_v42 = vrot.slane %v388_v15, 4 }
  0xfe   : > { %1584 = vmatmul.mubr.msk.f32.gmra.mrb[12].mxu0 %vm421_vm5, %v411_v32  ;;  %1686 = vmatprep.subr.msk.bf16.mxu1 %vm1953_vm3, %v2047_v53  ;;  %v696_v23 = vsel %vm695_vm6, %v693_v22, %v694_v18  ;;  %v857_v39 = vsel %vm855_vm7, %v852_v5, %v853_v28  ;;  %v856_v43 = vsel %vm855_vm7, %v853_v28, %v854_v29  ;;  %v1014_v46 = vrot.slane %v1572_v10, 4 }
  0xff   : > { %1586 = vmatprep.mubr.msk.f32.mxu0 %vm421_vm5, %v410_v40  ;;  %v863_v47 = vsel %vm855_vm7, %v854_v29, %v847_v34  ;;  %v1017_v48 = vsel %vm1015_vm8, %v1012_v9, %v1013_v42  ;;  %v1190_v52 = vadd.s32 8, %v1985_v25 }
 0x100   : > { %1610 = vmatmul.mubr.msk.f32.vlgmr.msra.gmra.mrb[2].mxu1 %vm421_vm5, %v701_v59  ;;  %v1016_v49 = vsel %vm1015_vm8, %v1013_v42, %v1014_v46  ;;  %v1023_v50 = vsel %vm1015_vm8, %v1014_v46, %v1007_v35 }
 0x101   : > { %1689 = vmatpush3.bf16.msk.msra.mxu1 %vm1953_vm3, %v2047_v53  ;;  %1612 = vmatprep.mubr.msk.f32.mxu1 %vm421_vm5, %v700_v60  ;;  %v1192_v53 = vand.u32 127, %v407_v24 }
 0x102   : > { %1587 = vmatmul.mubr.msk.f32.gmra.mrb[14].mxu0 %vm421_vm5, %v417_v30  ;;  %1692 = vmatprep.subr.msk.bf16.mxu1 %vm1953_vm3, %v2049_v54 }
 0x103   : > { %1593 = vmatprep.mubr.msk.f32.mxu0 %vm421_vm5, %v1993_v27  ;;  %v1193_v59 = vadd.s32 %v1192_v53, %v1985_v25 }
 0x104   : > { %1613 = vmatmul.mubr.msk.f32.gmra.mrb[4].mxu1 %vm421_vm5, %v699_v13 }
 0x105   : > { %1615 = vmatprep.mubr.msk.f32.mxu1 %vm421_vm5, %v698_v14  ;;  %vm1195_vm13 = vcmp.le.s32.totalorder %v1193_v59, 13 }
 0x106   : > { %1594 = vmatmul.mubr.msk.f32.vlgmr.msra.gmra.mrb[8].mxu0 %vm421_vm5, %v1988_v26  ;;  %v1837_v26 = vmov 0.0  }
 0x107   : > { %1596 = vmatprep.mubr.msk.f32.mxu0 %vm421_vm5, %v2037_v45  ;;  %1653 = vmatprep.subr.mxu0 %v1837_v26 }
 0x108   : > { %1616 = vmatmul.mubr.msk.f32.gmra.mrb[6].mxu1 %vm421_vm5, %v697_v33  ;;  %1654 = vmatpush3.msk.msra.mxu0 %vm1262_vm9, %v1242_v17 }
 0x109   : > { %1618 = vmatprep.mubr.msk.f32.mxu1 %vm421_vm5, %v696_v23 }
 0x10a   : > { %1597 = vmatmul.mubr.msk.f32.gmra.mrb[10].mxu0 %vm421_vm5, %v2006_v37 }
 0x10b   : > { %1599 = vmatprep.mubr.msk.f32.mxu0 %vm421_vm5, %v2062_v61 }
 0x10c   : > { %1619 = vmatmul.mubr.msk.f32.gmra.mrb[0].mxu1 %vm421_vm5, %v703_v31 }
 0x10d   : > { %1625 = vmatprep.mubr.msk.f32.mxu1 %vm421_vm5, %v2023_v41 }
 0x10e   : > { %1600 = vmatmul.mubr.msk.f32.gmra.mrb[12].mxu0 %vm421_vm5, %v2052_v56  ;;  %v1194_v56 = vadd.s32 %v1192_v53, %v1190_v52 }
 0x10f   : > { %1655 = vmatprep.mubr.msk.f32.mxu0 %vm1838_vm10, %v1837_v26 }
 0x110   : > { %1626 = vmatmul.mubr.msk.f32.vlgmr.msra.gmra.mrb[2].mxu1 %vm421_vm5, %v2069_v0  ;;  %vm1196_vm11 = vcmp.le.s32.totalorder %v1194_v56, 13 }
 0x111   : > { %1695 = vmatpush3.bf16.msk.msra.mxu1 %vm1953_vm3, %v2049_v54  ;;  %1628 = vmatprep.mubr.msk.f32.mxu1 %vm421_vm5, %v2073_v1 }
 0x114   : > { %1629 = vmatmul.mubr.msk.f32.gmra.mrb[4].mxu1 %vm421_vm5, %v859_v19 }
 0x115   : > { %1631 = vmatprep.mubr.msk.f32.mxu1 %vm421_vm5, %v858_v20 }
 0x118   : > { %1632 = vmatmul.mubr.msk.f32.gmra.mrb[6].mxu1 %vm421_vm5, %v857_v39 }
 0x119   : > { %1634 = vmatprep.mubr.msk.f32.mxu1 %vm421_vm5, %v856_v43 }
 0x11c   : > { %1635 = vmatmul.mubr.msk.f32.gmra.mrb[0].mxu1 %vm421_vm5, %v863_v47 }
 0x11d   : > { %1641 = vmatprep.mubr.msk.f32.mxu1 %vm421_vm5, %v2035_v44 }
 0x120   : > { %1642 = vmatmul.mubr.msk.f32.vlgmr.msra.gmra.mrb[2].mxu1 %vm421_vm5, %v2084_v6 }
 0x121   : > { %1644 = vmatprep.mubr.msk.f32.mxu1 %vm421_vm5, %v2088_v7 }
 0x124   : > { %1645 = vmatmul.mubr.msk.f32.gmra.mrb[4].mxu1 %vm421_vm5, %v1019_v36 }
 0x125   : > { %1647 = vmatprep.mubr.msk.f32.mxu1 %vm421_vm5, %v1018_v38 }
 0x128   : > { %1648 = vmatmul.mubr.msk.f32.gmra.mrb[6].mxu1 %vm421_vm5, %v1017_v48 }
 0x129   : > { %1650 = vmatprep.mubr.msk.f32.mxu1 %vm421_vm5, %v1016_v49 }
 0x12c   : > { %1651 = vmatmul.mubr.msk.f32.gmra.mrb[0].mxu1 %vm421_vm5, %v1023_v50 }
 0x1d5   : > { %v1588_v27 = vpop.f32.mrb[14].mxu0 }
 0x1d6   : > { %v546_v34 = vpop.f32.mrb[15].mxu0 }
 0x1d9   : > { %v1595_v35 = vpop.f32.mrb[8].mxu0 }
 0x1da   : > { %v648_v37 = vpop.f32.mrb[9].mxu0 }
 0x1dd   : > { %v1598_v41 = vpop.f32.mrb[10].mxu0 }
 0x1de   : > { %v658_v44 = vpop.f32.mrb[11].mxu0 }
 0x1e1   : > { %v1601_v45 = vpop.f32.mrb[12].mxu0 }
 0x1e2   : > { %v668_v51 = vpop.f32.mrb[13].mxu0 }
 0x1f3   : > { %v1643_v54 = vpop.f32.mrb[2].mxu1 }
 0x1f4   : > { %v1698_v57 = vadd.f32 %v1643_v54, %v1595_v35  ;;  %v1120_v58 = vpop.f32.mrb[3].mxu1 }
 0x1f5   : > { %v1699_v60 = vadd.f32 %v1120_v58, %v648_v37 }
 0x1f6   : > { %v1175_v61 = vadd.f32 %v1698_v57, %v1480_v55 }
 0x1f7   : > { %v1174_v62 = vadd.f32 %v1699_v60, %v1480_v55  ;;  %v1646_v63 = vpop.f32.mrb[4].mxu1 }
 0x1f8   : > { %v1183_v0 = vmax.f32 %v1175_v61, 0.0  ;;  %v1700_v1 = vadd.f32 %v1646_v63, %v1598_v41  ;;  %v1130_v24 = vpop.f32.mrb[5].mxu1 }
 0x1f9   : > { %v1182_v2 = vmax.f32 %v1174_v62, 0.0  ;;  %v1701_v3 = vadd.f32 %v1130_v24, %v658_v44 }
 0x1fa   : > { %v1198_v4 = vsel %vm1196_vm11, %v1183_v0, 0.0  ;;  %v1177_v5 = vadd.f32 %v1700_v1, %v1480_v55 }
 0x1fb   : > { %v1207_v6 = vsel %vm1205_vm12, %v1198_v4, -inf  ;;  %v1197_v7 = vsel %vm1195_vm13, %v1182_v2, 0.0  ;;  %v1176_v25 = vadd.f32 %v1701_v3, %v1480_v55  ;;  %v1649_v8 = vpop.f32.mrb[6].mxu1 }
 0x1fc   : > { %v1206_v9 = vsel %vm1205_vm12, %v1197_v7, -inf  ;;  %v1185_v10 = vmax.f32 %v1177_v5, 0.0  ;;  %v1702_v11 = vadd.f32 %v1649_v8, %v1601_v45  ;;  %v1140_v12 = vpop.f32.mrb[7].mxu1  ;;  %v1481_v7 = vld [vmem:[%s2285_s5] ss:$0 sm:$0xff] }
 0x1fd   : > { %v1208_v13 = vmax.f32 %v1206_v9, %v1207_v6  ;;  %v1184_v14 = vmax.f32 %v1176_v25, 0.0  ;;  %v1703_v15 = vadd.f32 %v1140_v12, %v668_v51 }
 0x1fe   : > { %v1200_v16 = vsel %vm1196_vm11, %v1185_v10, 0.0  ;;  %v1179_v18 = vadd.f32 %v1702_v11, %v1480_v55 }
 0x1ff   : > { %v1209_v19 = vrot.slane %v1208_v13, 4  ;;  %v1216_v20 = vsel %vm1205_vm12, %v1200_v16, -inf  ;;  %v1199_v21 = vsel %vm1195_vm13, %v1184_v14, 0.0  ;;  %v1178_v22 = vadd.f32 %v1703_v15, %v1480_v55  ;;  %v1652_v28 = vpop.f32.mrb[0].mxu1 }
 0x200   : > { %v1215_v29 = vsel %vm1205_vm12, %v1199_v21, -inf  ;;  %v1187_v30 = vmax.f32 %v1179_v18, 0.0  ;;  %v1704_v31 = vadd.f32 %v1652_v28, %v1588_v27  ;;  %v1150_v36 = vpop.f32.mrb[1].mxu1 }
 0x201   : > { %v1210_v38 = vmax.f32 %v1208_v13, %v1209_v19  ;;  %v1217_v32 = vmax.f32 %v1215_v29, %v1216_v20  ;;  %v1186_v40 = vmax.f32 %v1178_v22, 0.0  ;;  %v1705_v33 = vadd.f32 %v1150_v36, %v546_v34 }
 0x202   : > { %v1202_v42 = vsel %vm1196_vm11, %v1187_v30, 0.0  ;;  %v1181_v23 = vadd.f32 %v1704_v31, %v1480_v55 }
 0x203   : > { %v1211_v39 = vrot.slane %v1210_v38, 2  ;;  %v1218_v43 = vrot.slane %v1217_v32, 4  ;;  %v1225_v46 = vsel %vm1205_vm12, %v1202_v42, -inf  ;;  %v1201_v47 = vsel %vm1195_vm13, %v1186_v40, 0.0 }
 0x204   : > { %v1224_v48 = vsel %vm1205_vm12, %v1201_v47, -inf  ;;  %v1189_v49 = vmax.f32 %v1181_v23, 0.0  ;;  %v1180_v50 = vadd.f32 %v1705_v33, %v1480_v55 }
 0x205   : > { %v1212_v17 = vmax.f32 %v1210_v38, %v1211_v39  ;;  %v1219_v26 = vmax.f32 %v1217_v32, %v1218_v43  ;;  %v1226_v27 = vmax.f32 %v1224_v48, %v1225_v46 }
 0x206   : > { %v1204_v35 = vsel %vm1196_vm11, %v1189_v49, 0.0  ;;  %v1188_v37 = vmax.f32 %v1180_v50, 0.0 }
 0x207   : > { %v1220_v34 = vrot.slane %v1219_v26, 2  ;;  %v1227_v41 = vrot.slane %v1226_v27, 4  ;;  %v1234_v44 = vsel %vm1205_vm12, %v1204_v35, -inf  ;;  %v1213_v51 = vrot.slane %v1212_v17, 1 }
 0x208   : > { %v1203_v45 = vsel %vm1195_vm13, %v1188_v37, 0.0 }
 0x209   : > { %v1221_v52 = vmax.f32 %v1219_v26, %v1220_v34  ;;  %v1228_v53 = vmax.f32 %v1226_v27, %v1227_v41  ;;  %v1233_v54 = vsel %vm1205_vm12, %v1203_v45, -inf  ;;  %v1214_v61 = vmax.f32 %v1212_v17, %v1213_v51 }
 0x20a   : > { %v1235_v57 = vmax.f32 %v1233_v54, %v1234_v44 }
 0x20b   : > { %v1222_v58 = vrot.slane %v1221_v52, 1  ;;  %v1229_v55 = vrot.slane %v1228_v53, 2 }
 0x20c   : > { %v1236_v60 = vrot.slane %v1235_v57, 4 }
 0x20d   : > { %v1223_v56 = vmax.f32 %v1221_v52, %v1222_v58  ;;  %v1230_v62 = vmax.f32 %v1228_v53, %v1229_v55 }
 0x20e   : > { %v1237_v63 = vmax.f32 %v1235_v57, %v1236_v60 }
 0x20f   : > { %v1231_v0 = vrot.slane %v1230_v62, 1  ;;  %v1255_v1 = vsel %vm1254_vm14, %v1223_v56, %v1214_v61 }
 0x210   : > { %v1238_v59 = vrot.slane %v1237_v63, 2 }
 0x211   : > { %v1232_v24 = vmax.f32 %v1230_v62, %v1231_v0 }
 0x212   : > { %v1239_v2 = vmax.f32 %v1237_v63, %v1238_v59 }
 0x213   : > { %v1257_v3 = vsel %vm1256_vm15, %v1232_v24, %v1255_v1 }
 0x214   : > { %v1240_v4 = vrot.slane %v1239_v2, 1 }
 0x216   : > { %v1241_v5 = vmax.f32 %v1239_v2, %v1240_v4 }
 0x218   : > { %v1259_v6 = vsel %vm1258_vm0, %v1241_v5, %v1257_v3 }
 0x219   : > { %1656 = vmatmul.mubr.msk.f32.vlgmr.msra.gmra.mrb[16].mxu0 %vm1205_vm12, %v1259_v6 }
 0x2ec   : > { %v1332_v25 = vpop.f32.mrb[16].mxu0 }
 0x2ed   : > { %v1333_v8 = vadd.f32 %v1481_v7, %v1332_v25  ;;  %v1657_v9 = vpop.f32.mrb[17].mxu0 }
 0x2ef   : > { %1337 = vst.msk [vmem:[%s247_s26] sm:$0xf] %vm1336_vm1, %v1333_v8 }
 0x2f0   : > { %1785 = shalt.err (!%p1782_p3)
}
 0x2f1   : > { %s1786_s15 = scalar_lea.hbm %s2238_s10, 64  ;;  %s1790_s18 = scalar_lea.hbm %s2286_s6, 128 }
 0x2f2   : > { %p1787_p4 = scmp.ne.s32.totalorder %s2238_s10, %s1786_s15  ;;  %p1791_p9 = scmp.lt.u32.totalorder %s2238_s10, %s2286_s6 }
 0x2f3   : > { %p1792_p10 = scmp.lt.u32.totalorder %s1790_s18, %s1786_s15  ;;  %p1794_p12 = scmp.lt.u32.totalorder %s1786_s15, %s2238_s10 }
 0x2f4   : > { %p1788_p7 = pnand %p1787_p4, %p1913_p5 }
 0x2f5   : > { %p1793_p11 = por %p1792_p10, %p1791_p9 }
 0x2f6   : > { %p1789_p8 = pneg %p1788_p7 }
 0x2f7   : > { %p1795_p13 = por %p1794_p12, %p1793_p11 }
 0x2f9   : > { %p1796_p0 = pnand %p1795_p13, %p1789_p8 }
 0x2fb   : > { %1799 = shalt.err (!%p1796_p0)
}
 0x2fc   : > { %1730 = dma.vmem_to_hbm [thread:$0]  (%p1913_p5), %s2240_s28, 64, %s2238_s10, %s1339_s11  }
 0x2fd PF: > { %p1736_p1 = scmp.ge.s32.totalorder %s1834_s24, 2  ;;  %s1364_s26 = sand.u32 1, %s1822_s21  }
 0x2fe   : > { %s1365_s29 = scalar_lea.sflag [#allocation3], %s1364_s26 }
 0x2ff   : > { %p1733_p2 = pnand %p1736_p1, %p1917_p6 }
 0x301   : > { %1817 = dma.done.wait (!%p1733_p2), %s1365_s29, 64  }
 0x302   : > { %1819 = vsyncadd (!%p1733_p2), %s1365_s29, 4294967232  ;;  %p16_p3 = scmp.ge.s32.totalorder %s1900_s27, 4   ;;  %s2291_s21 = smov %s1826_s22 }
 0x303   : > { %s2292_s22 = smov %s1830_s23  ;;  %s2293_s23 = smov %s1911_s30 }
 0x304   : > { %s2294_s24 = smov %s1900_s27  ;;  %18 = sbr.rel (!%p16_p3) target bundleno = 3 (0x3), region = 83 }
 0x30b   :  { %1370 = vsyncpa [#allocation3], 1 }
 0x30c   :  { %1372 = vsyncpa [#allocation3 + $0x1], 1 }

</bundles_post_ra>
